<compile_context>
chip_gen: v6e
topology: v6e:2x2x1
jax: 0.10.0
libtpu: 0.0.40
codegen_flags: <defaults>
</compile_context>

<pallas_src>
import functools
import math

import jax
import jax.numpy as jnp
from jax.experimental import pallas as pl
from jax.experimental.pallas import tpu as pltpu


def _glu_kernel(a_ref, b_ref, o_ref):
    a = a_ref[...]
    b = b_ref[...].astype(jnp.float32)
    # sigmoid(b) = 1 / (1 + exp(-b)); exp and approx-reciprocal both run on
    # the EUP slot, keeping the 4-VALU budget free -> kernel stays DMA-bound.
    s = pl.reciprocal(1.0 + jnp.exp(-b), approx=True)
    # Do the final multiply in the input dtype (saves the f32 round-trip for
    # bf16 on v6e/v7x; a no-op for f32).
    o_ref[...] = (a * s.astype(a.dtype)).astype(o_ref.dtype)


_SUBLANE = {4: 8, 2: 16, 1: 32}  # dtype bytes -> min sublane multiple


def _glu_2d(x2d: jax.Array, n: int) -> jax.Array:
    """x2d: (L, 2*n) with n % 128 == 0  ->  (L, n) = a * sigmoid(b)."""
    L, two_n = x2d.shape
    assert two_n == 2 * n and n % 128 == 0
    dtype = x2d.dtype
    itemsize = jnp.dtype(dtype).itemsize
    sub = _SUBLANE.get(itemsize, 8)

    # Column tile: largest of {1024, 512, 256, 128} that divides each half.
    tn = 128
    for cand in (1024, 512, 256):
        if n % cand == 0:
            tn = cand
            break

    # Row tile: sized so the double-buffered footprint
    # (2 pipeline buffers x (a + b + out) tiles) stays <= ~24 MiB, which fits
    # the 32 MiB scoped-VMEM limit on every generation (v7x: 64 MiB physical).
    budget = 24 * 1024 * 1024
    max_rows = max(sub, budget // (2 * 3 * tn * itemsize))
    tl = max(sub, min(2048, (max_rows // sub) * sub))
    if L <= tl:
        tl = L  # full row extent (legal block: equals full array dim)

    # Make sure both TensorCores (v7x megacore) get work: if the grid would
    # collapse to a single block, split columns (preferred) or rows.
    if pl.cdiv(L, tl) * (n // tn) < 2:
        for cand in (512, 256, 128):
            if cand < tn and n % cand == 0 and n // cand >= 2:
                tn = cand
                break
        if pl.cdiv(L, tl) * (n // tn) < 2 and L > sub:
            tl = max(sub, ((pl.cdiv(L, 2) + sub - 1) // sub) * sub)

    n_col_blocks = n // tn
    grid = (pl.cdiv(L, tl), n_col_blocks)  # ragged row tail masked by Pallas

    return pl.pallas_call(
        _glu_kernel,
        out_shape=jax.ShapeDtypeStruct((L, n), dtype),
        grid_spec=pltpu.PrefetchScalarGridSpec(
            num_scalar_prefetch=0,
            grid=grid,
            in_specs=[
                # a-half: columns [0, n), lane-aligned blocks.
                pl.BlockSpec((tl, tn), lambda i, j: (i, j)),
                # b-half: columns [n, 2n) => column-block offset n // tn.
                pl.BlockSpec((tl, tn), lambda i, j: (i, j + n_col_blocks)),
            ],
            out_specs=pl.BlockSpec((tl, tn), lambda i, j: (i, j)),
        ),
        compiler_params=pltpu.CompilerParams(
            dimension_semantics=("parallel", "parallel"),
            vmem_limit_bytes=32 * 1024 * 1024,
        ),
    )(x2d, x2d)


@functools.partial(jax.jit, static_argnames=("dim",))
def glu(x: jax.Array, dim: int = -1) -> jax.Array:
    """Pallas GLU equivalent of torch.nn.functional.glu(x, dim)."""
    d = dim % x.ndim
    c = x.shape[d]
    if c % 2 != 0:
        raise ValueError("GLU split dimension must be even.")
    h = c // 2
    lead = x.shape[:d]
    trail = x.shape[d + 1 :]
    L = math.prod(lead) if lead else 1
    T = math.prod(trail) if trail else 1
    n = h * T  # per-half flattened width (row-major contiguous)

    if n % 128 == 0:
        # Fast path: free reshape, both halves lane-aligned, Pallas kernel.
        x2d = x.reshape(L, 2 * n)
        y2d = _glu_2d(x2d, n)
        return y2d.reshape(*lead, h, *trail)

    # Lane-misaligned half width: a pad+kernel+slice path would ~3x the HBM
    # traffic of this bandwidth-bound op, so let XLA fuse one streaming pass.
    a, b = jnp.split(x, 2, axis=d)
    return a * jax.nn.sigmoid(b)


def _ref_glu(x, dim):
    a, b = jnp.split(x, 2, axis=dim)
    return a * jax.nn.sigmoid(b)


if __name__ == "__main__":
    key = jax.random.PRNGKey(0)
    k1, k2, k3, k4 = jax.random.split(key, 4)

    # approx reciprocal trades a few mantissa bits; ~1e-3 relative is expected.
    TOL = dict(atol=1e-2, rtol=1e-2)

    # 1) NCT tensor, GLU over channels (dim=1), lane-aligned fast path.
    x1 = jax.random.normal(k1, (2, 8, 32), dtype=jnp.float32)
    o1 = jax.block_until_ready(glu(x1, dim=1))
    assert o1.shape == (2, 4, 32), o1.shape
    assert jnp.allclose(o1, _ref_glu(x1, 1), **TOL)

    # 2) Ragged half-width (H*T = 30) -> fused XLA fallback (no extra copies).
    x2 = jax.random.normal(k2, (3, 6, 10), dtype=jnp.float32)
    o2 = jax.block_until_ready(glu(x2, dim=1))
    assert o2.shape == (3, 3, 10), o2.shape
    assert jnp.allclose(o2, _ref_glu(x2, 1), atol=1e-6, rtol=1e-6)

    # 3) Split along the last axis (dim=-1); exercises the row-split path
    #    that keeps >=2 grid blocks for the two v7x TensorCores.
    x3 = jax.random.normal(k3, (2, 8, 256), dtype=jnp.float32)
    o3 = jax.block_until_ready(glu(x3, dim=-1))
    assert o3.shape == (2, 8, 128), o3.shape
    assert jnp.allclose(o3, _ref_glu(x3, -1), **TOL)

    # 4) bf16 path (native-dtype final multiply) + column-split path.
    x4 = jax.random.normal(k4, (4, 16, 128), dtype=jnp.float32).astype(jnp.bfloat16)
    o4 = jax.block_until_ready(glu(x4, dim=1))
    assert o4.shape == (4, 8, 128), o4.shape
    ref4 = _ref_glu(x4.astype(jnp.float32), 1)
    assert jnp.allclose(o4.astype(jnp.float32), ref4, atol=3e-2, rtol=3e-2)

    print("KERNEL_OK")
</pallas_src>

<mosaic_0001>
module attributes {stable_mosaic.version = 11 : i64} {
  func.func @_glu_kernel(%arg0: i32, %arg1: i32, %arg2: memref<2x128xf32, #tpu.memory_space<vmem>>, %arg3: memref<2x128xf32, #tpu.memory_space<vmem>>, %arg4: memref<2x128xf32, #tpu.memory_space<vmem>>) attributes {dimension_semantics = [#tpu.dimension_semantics<parallel>, #tpu.dimension_semantics<parallel>], iteration_bounds = array<i64: 1, 1>, scalar_prefetch = 0 : i64, scratch_operands = 0 : i64, tpu.core_type = #tpu.core_type<tc>, window_params = [{transform_indices = @transform_0, window_bounds = array<i64: 2, 128>}, {transform_indices = @transform_1, window_bounds = array<i64: 2, 128>}, {transform_indices = @transform_2, window_bounds = array<i64: 2, 128>}]} {
    %c0 = arith.constant 0 : index
    %c0_0 = arith.constant 0 : index
    %0 = vector.load %arg2[%c0, %c0_0] : memref<2x128xf32, #tpu.memory_space<vmem>>, vector<2x128xf32>
    %c0_1 = arith.constant 0 : index
    %c0_2 = arith.constant 0 : index
    %1 = vector.load %arg3[%c0_1, %c0_2] : memref<2x128xf32, #tpu.memory_space<vmem>>, vector<2x128xf32>
    %cst = arith.constant 0.000000e+00 : f32
    %2 = vector.broadcast %cst : f32 to vector<2x128xf32>
    %3 = arith.subf %2, %1 : vector<2x128xf32>
    %4 = math.exp %3 : vector<2x128xf32>
    %cst_3 = arith.constant 1.000000e+00 : f32
    %5 = vector.broadcast %cst_3 : f32 to vector<2x128xf32>
    %6 = arith.addf %5, %4 : vector<2x128xf32>
    %7 = tpu.reciprocal %6 {approx = true} : vector<2x128xf32> -> vector<2x128xf32>
    %8 = arith.mulf %0, %7 : vector<2x128xf32>
    %c0_4 = arith.constant 0 : index
    %c0_5 = arith.constant 0 : index
    %9 = vector.load %arg4[%c0_4, %c0_5] : memref<2x128xf32, #tpu.memory_space<vmem>>, vector<2x128xf32>
    tpu.vector_store %arg4[%c0_4, %c0_5], %8 {strides = array<i32>} : memref<2x128xf32, #tpu.memory_space<vmem>>, vector<2x128xf32>,
    return
  }
  func.func @transform_0(%arg0: i32, %arg1: i32) -> (i32, i32) {
    %c0_i32 = arith.constant 0 : i32
    return %arg0, %arg1 : i32, i32
  }
  func.func @transform_1(%arg0: i32, %arg1: i32) -> (i32, i32) {
    %c1_i32 = arith.constant 1 : i32
    %0 = arith.addi %arg1, %c1_i32 : i32
    %c0_i32 = arith.constant 0 : i32
    return %arg0, %0 : i32, i32
  }
  func.func @transform_2(%arg0: i32, %arg1: i32) -> (i32, i32) {
    %c0_i32 = arith.constant 0 : i32
    return %arg0, %arg1 : i32, i32
  }
}

</mosaic_0001>

<bundles_post_ra>
// kernel: glu.1
= control target key start
LH: loop header
LB: loop body
LE: loop exit
PB: predicated region body
PF: predicated region fallthrough
CT: control target
= control target key end

     0   :  { %s76_s1 = inlined_call_operand.vmem [shape: f32[2,256], index: 1, kind: input, shape index: {}, may-alias: {0,1}]   ;;  %s77_s0 = inlined_call_operand.vmem [shape: f32[2,256], index: 0, kind: input, shape index: {}, may-alias: {0,1}]   ;;  %s78_s2 = inlined_call_operand.vmem [shape: f32[2,128], index: 2, kind: output, shape index: {}]  }
   0x1   :  { %v47_v0 = vld [vmem:[%s76_s1 + $0x2] sm:$0x3]  ;;  %v28_v5 = vld [vmem:[%s77_s0] sm:$0x3] }
   0x2   :  { %v30_v1 = vsub.f32 0.0, %v47_v0 }
   0x4   :  { %v31_v2 = vmul.f32 1.442695, %v30_v1 }
   0x6   :  { %48 = vpow2.f32 %v31_v2 }
  0x13   :  { %v49_v3 = vpop.eup %48 }
  0x14   :  { %v33_v4 = vadd.f32 1.0, %v49_v3 }
  0x16   :  { %50 = vrcp.f32 %v33_v4 }
  0x23   :  { %v51_v6 = vpop.eup %50 }
  0x24   :  { %v35_v7 = vmul.f32 %v51_v6, %v28_v5 }
  0x26   :  { %36 = vst [vmem:[%s78_s2] sm:$0x3] %v35_v7 }

</bundles_post_ra>
